<compile_context>
chip_gen: v5e
topology: v5e:2x2
jax: 0.10.0
libtpu: 0.0.40
codegen_flags: <defaults>
</compile_context>

<pallas_src>
import numpy as np
import jax
import jax.numpy as jnp
from jax import lax
from jax.experimental import pallas as pl
from jax.experimental.pallas import tpu as pltpu

_ONEHOT_MAX_V = 2048          # above this the (TB, V) one-hot temp gets too big
_LANE = 128                   # f32 lane width
_SUBLANE = 8                  # f32 sublane count


# --------------------------------------------------------------------------- #
# Path 1 (primary): one-hot MXU gather, table VMEM-resident.
# --------------------------------------------------------------------------- #
def _onehot_gather_kernel(ids_ref, table_ref, out_ref):
    """ids_ref:   VMEM (TB, 1) int32   per-tile, offset-added row ids
       table_ref: VMEM (V, Dp) f32     full table (constant index_map -> resident)
       out_ref:   VMEM (TB, Dp) f32    dense output tile"""
    tb = out_ref.shape[0]
    v = table_ref.shape[0]
    onehot = (lax.broadcasted_iota(jnp.int32, (tb, v), 1)
              == ids_ref[...]).astype(table_ref.dtype)
    # precision=HIGHEST keeps the f32 table values through the MXU bf16 passes.
    out_ref[...] = jnp.dot(
        onehot, table_ref[...],
        preferred_element_type=jnp.float32,
        precision=lax.Precision.HIGHEST,
    ).astype(out_ref.dtype)


# --------------------------------------------------------------------------- #
# Path 2 (fallback, V > _ONEHOT_MAX_V but table still fits VMEM):
# unrolled row-gather, per-row stores, no concatenate.
# --------------------------------------------------------------------------- #
def _row_gather_kernel(ids_ref, table_ref, out_ref):
    """ids_ref:   SMEM (TB,) int32 (per-tile block)
       table_ref: VMEM (V, Dp) f32 (resident)
       out_ref:   VMEM (TB, Dp) f32"""
    tb = out_ref.shape[0]

    def body(u, carry):
        r = ids_ref[u]
        out_ref[pl.ds(u, 1), :] = table_ref[pl.ds(r, 1), :]
        return carry

    lax.fori_loop(0, tb, body, 0, unroll=8)


# --------------------------------------------------------------------------- #
# Path 3 (fallback, table does not fit VMEM): per-row HBM gather via Element
# row blocking.  TODO(synk): replace with a manual multi-row, >=4-deep
# double-buffered DMA gather (make_async_copy) for large tables.
# --------------------------------------------------------------------------- #
def _hbm_row_gather_kernel(ids_ref, row_ref, out_ref):
    del ids_ref  # only used by the index_maps
    out_ref[...] = row_ref[...]


# --------------------------------------------------------------------------- #
# Wrapper
# --------------------------------------------------------------------------- #
def embedding_layer_pallas(x, offsets, table, *, tile_rows=512):
    """x: (B, F) int indices; offsets: (F,) int; table: (V, D) float32.
    Returns (B, F, D) float32 == table[x + offsets[None, :]]."""
    B, F = x.shape
    V, D = table.shape

    # Fold the per-field offset add into the wrapper (one fused XLA add) and
    # clamp as a cheap guard against silent OOB VMEM reads in the kernels.
    flat_ids = (x.astype(jnp.int32) + offsets.astype(jnp.int32)[None, :]).reshape(-1)
    flat_ids = jnp.clip(flat_ids, 0, V - 1)
    n = B * F

    # Lane-pad the embed dim so every output store is unmasked / lane-dense.
    Dp = pl.cdiv(D, _LANE) * _LANE
    table_p = table if Dp == D else jnp.pad(table, ((0, 0), (0, Dp - D)))

    # Rows per grid step: multiple of 8 (f32 sublane), default 512, capped at n.
    tb = min(int(tile_rows), pl.cdiv(n, _SUBLANE) * _SUBLANE)
    tb = max(_SUBLANE, (tb // _SUBLANE) * _SUBLANE)
    n_pad = pl.cdiv(n, tb) * tb
    if n_pad != n:
        flat_ids = jnp.pad(flat_ids, (0, n_pad - n))   # pad with row 0 (valid)
    num_steps = n_pad // tb

    # --- generation-aware VMEM budgeting (v5e/v6e: 128 MiB, v7x: 64 MiB) ----
    try:
        vmem_cap = int(pltpu.get_tpu_info().vmem_capacity_bytes)
    except Exception:  # pragma: no cover - conservative default (v7x)
        vmem_cap = 64 << 20
    budget = (vmem_cap * 3) // 4

    table_bytes = V * Dp * 4
    out_tile = tb * Dp * 4
    ids_tile = tb * _LANE * 4                 # (TB, 1) int32 lane-pads to 128
    onehot_tmp = tb * max(V, _LANE) * 4
    # Note: the constant-index_map table is still allocated double-buffered by
    # the pipeline; pipeline_mode=pl.Buffered(1) would halve this on v7x.
    resident_need = 2 * table_bytes + 2 * out_tile
    onehot_need = resident_need + 2 * ids_tile + onehot_tmp

    def _limit(need):
        return int(min(budget, max(need + (4 << 20), 16 << 20)))

    if V <= _ONEHOT_MAX_V and onehot_need + (4 << 20) <= budget:
        # ---------------- Path 1: one-hot MXU gather -------------------------
        ids2d = flat_ids.reshape(n_pad, 1)
        out_flat = pl.pallas_call(
            _onehot_gather_kernel,
            out_shape=jax.ShapeDtypeStruct((n_pad, Dp), table.dtype),
            grid_spec=pltpu.PrefetchScalarGridSpec(
                num_scalar_prefetch=0,
                grid=(num_steps,),
                in_specs=[
                    pl.BlockSpec((tb, 1), lambda i: (i, 0)),       # per-tile ids
                    pl.BlockSpec((V, Dp), lambda i: (0, 0)),       # resident table
                ],
                out_specs=pl.BlockSpec((tb, Dp), lambda i: (i, 0)),
            ),
            compiler_params=pltpu.CompilerParams(
                dimension_semantics=("parallel",),     # disjoint output tiles
                vmem_limit_bytes=_limit(onehot_need),
            ),
        )(ids2d, table_p)
    elif resident_need + (4 << 20) <= budget:
        # ---------------- Path 2: resident-table row gather ------------------
        out_flat = pl.pallas_call(
            _row_gather_kernel,
            out_shape=jax.ShapeDtypeStruct((n_pad, Dp), table.dtype),
            grid_spec=pltpu.PrefetchScalarGridSpec(
                num_scalar_prefetch=0,
                grid=(num_steps,),
                in_specs=[
                    pl.BlockSpec((tb,), lambda i: (i,),
                                 memory_space=pltpu.MemorySpace.SMEM),
                    pl.BlockSpec((V, Dp), lambda i: (0, 0)),
                ],
                out_specs=pl.BlockSpec((tb, Dp), lambda i: (i, 0)),
            ),
            compiler_params=pltpu.CompilerParams(
                dimension_semantics=("parallel",),
                vmem_limit_bytes=_limit(resident_need),
            ),
        )(flat_ids, table_p)
    else:
        # ---------------- Path 3: table stays in HBM -------------------------
        # TODO(synk): multi-row double-buffered DMA gather for very large tables.
        out_flat = pl.pallas_call(
            _hbm_row_gather_kernel,
            out_shape=jax.ShapeDtypeStruct((n_pad, Dp), table.dtype),
            grid_spec=pltpu.PrefetchScalarGridSpec(
                num_scalar_prefetch=1,                 # ids -> SMEM for index_map
                grid=(n_pad,),
                in_specs=[
                    pl.BlockSpec((pl.Element(1), Dp),
                                 lambda i, ids: (ids[i], 0)),
                ],
                out_specs=pl.BlockSpec((1, Dp), lambda i, ids: (i, 0)),
            ),
            compiler_params=pltpu.CompilerParams(
                dimension_semantics=("arbitrary",),
            ),
        )(flat_ids, table_p)

    return out_flat[:n, :D].reshape(B, F, D)


def make_params(field_dims, embed_dim, key):
    """Deterministic Xavier-uniform embedding table + field offsets."""
    vocab = int(sum(field_dims))
    bound = float(np.sqrt(6.0 / (vocab + embed_dim)))   # xavier_uniform_ on (V, D)
    table = jax.random.uniform(
        key, (vocab, embed_dim), dtype=jnp.float32, minval=-bound, maxval=bound)
    offsets = jnp.asarray(
        np.array((0, *np.cumsum(field_dims)[:-1]), dtype=np.int32))
    return table, offsets


if __name__ == "__main__":
    field_dims = (5, 7, 11, 9)          # sum = 32 embedding rows
    embed_dim = 128                     # lane-aligned embedding width
    batch = 40                          # B*F = 160 -> one 160-row tile
    num_fields = len(field_dims)

    key = jax.random.PRNGKey(0)
    k_table, *k_fields = jax.random.split(key, 1 + num_fields)

    table, offsets = make_params(field_dims, embed_dim, k_table)

    # Per-field indices in [0, field_dims[f])
    cols = [
        jax.random.randint(k_fields[f], (batch, 1), 0, field_dims[f], dtype=jnp.int32)
        for f in range(num_fields)
    ]
    x = jnp.concatenate(cols, axis=1)   # (batch, num_fields) int32

    out = embedding_layer_pallas(x, offsets, table)
    out = jax.block_until_ready(out)

    # Reference (plain JAX).  The MXU one-hot path uses precision=HIGHEST
    # (bf16x multi-pass), so compare with a tight-but-nonzero tolerance.
    ref = table[x + offsets[None, :]]
    assert out.shape == (batch, num_fields, embed_dim)
    assert out.dtype == jnp.float32
    np.testing.assert_allclose(np.asarray(out), np.asarray(ref), rtol=1e-6, atol=1e-6)

    print("KERNEL_OK")
</pallas_src>

<mosaic_0001>
module attributes {stable_mosaic.version = 11 : i64} {
  func.func @_onehot_gather_kernel(%arg0: i32, %arg1: memref<160x1xi32, #tpu.memory_space<vmem>>, %arg2: memref<32x128xf32, #tpu.memory_space<vmem>>, %arg3: memref<160x128xf32, #tpu.memory_space<vmem>>) attributes {dimension_semantics = [#tpu.dimension_semantics<parallel>], iteration_bounds = array<i64: 1>, scalar_prefetch = 0 : i64, scratch_operands = 0 : i64, tpu.core_type = #tpu.core_type<tc>, window_params = [{transform_indices = @transform_0, window_bounds = array<i64: 160, 1>}, {pipeline_mode = #tpu.pipeline_mode<synchronous>, transform_indices = @transform_1, window_bounds = array<i64: 32, 128>}, {transform_indices = @transform_2, window_bounds = array<i64: 160, 128>}]} {
    %0 = tpu.iota {dimensions = array<i32: 1>} : vector<160x32xi32>
    %c0 = arith.constant 0 : index
    %c0_0 = arith.constant 0 : index
    %1 = vector.load %arg1[%c0, %c0_0] : memref<160x1xi32, #tpu.memory_space<vmem>>, vector<160x1xi32>
    %2 = vector.broadcast %1 : vector<160x1xi32> to vector<160x32xi32>
    %3 = arith.cmpi eq, %0, %2 : vector<160x32xi32>
    %4 = arith.extui %3 : vector<160x32xi1> to vector<160x32xi32>
    %5 = arith.sitofp %4 : vector<160x32xi32> to vector<160x32xf32>
    %c0_1 = arith.constant 0 : index
    %c0_2 = arith.constant 0 : index
    %6 = vector.load %arg2[%c0_1, %c0_2] : memref<32x128xf32, #tpu.memory_space<vmem>>, vector<32x128xf32>
    %cst = arith.constant dense<0.000000e+00> : vector<160x128xf32>
    %7 = tpu.matmul %5, %6, %cst {dimension_numbers = #tpu.dot_dimension_numbers<[1], [0], [0], [1], [0, 0, 1, 1], [], []>, precision = #tpu.contract_precision<fp32>} : vector<160x32xf32>, vector<32x128xf32>, vector<160x128xf32> -> vector<160x128xf32>
    %c0_3 = arith.constant 0 : index
    %c0_4 = arith.constant 0 : index
    %8 = vector.load %arg3[%c0_3, %c0_4] : memref<160x128xf32, #tpu.memory_space<vmem>>, vector<160x128xf32>
    tpu.vector_store %arg3[%c0_3, %c0_4], %7 {strides = array<i32>} : memref<160x128xf32, #tpu.memory_space<vmem>>, vector<160x128xf32>,
    return
  }
  func.func @transform_0(%arg0: i32) -> (i32, i32) {
    %c0_i32 = arith.constant 0 : i32
    %c0_i32_0 = arith.constant 0 : i32
    return %arg0, %c0_i32 : i32, i32
  }
  func.func @transform_1(%arg0: i32) -> (i32, i32) {
    %c0_i32 = arith.constant 0 : i32
    %c0_i32_0 = arith.constant 0 : i32
    %c0_i32_1 = arith.constant 0 : i32
    return %c0_i32, %c0_i32_0 : i32, i32
  }
  func.func @transform_2(%arg0: i32) -> (i32, i32) {
    %c0_i32 = arith.constant 0 : i32
    %c0_i32_0 = arith.constant 0 : i32
    return %arg0, %c0_i32 : i32, i32
  }
}

</mosaic_0001>

<bundles_post_ra>
// kernel: tpu_custom_call.1
= control target key start
LH: loop header
LB: loop body
LE: loop exit
PB: predicated region body
PF: predicated region fallthrough
CT: control target
= control target key end

     0   :  { %v1153_v3 = vmov 0   ;;  %s1744_s0 = inlined_call_operand.vmem [shape: s32[160,1], index: 0, kind: input, shape index: {}]   ;;  %s1745_s1 = inlined_call_operand.vmem [shape: f32[32,128], index: 1, kind: input, shape index: {}]   ;;  %s1746_s2 = inlined_call_operand.hbm [shape: f32[160,128], index: 2, kind: output, shape index: {}]  }
   0x1   :  { %v24_v0 = vld [vmem:[%s1744_s0 + $0x50] sm:$0xff]  ;;  %v15_v1 = vld [vmem:[%s1744_s0 + $0x8] sm:$0xff]  ;;  %v14_v2 = vld [vmem:[%s1744_s0] sm:$0xff]  ;;  %1126 = vset.pattern.permute.xlu2 %v1153_v3  ;;  %1125 = vset.pattern.permute.xlu1 %v1153_v3 }
   0x2   :  { %1124 = vset.pattern.permute.xlu0 %v1153_v3  ;;  %38 = vperm.xlu2 %1126, %v15_v1  }
   0x3   :  { %65 = vperm.xlu0 %1124, %v24_v0   ;;  %35 = vperm.xlu1 %1125, %v14_v2  }
   0x4   :  { %7 = vsyncpa [#allocation3], 0  ;;  %v27_v4 = vld [vmem:[%s1744_s0 + $0x68] sm:$0xff]  ;;  %v25_v5 = vld [vmem:[%s1744_s0 + $0x58] sm:$0xff]  ;;  %v12_v45 = vlaneseq  ;;  %v1154_v48 = vmov 0.0   ;;  %vm158_vm1 = vcmask 261120  }
   0x5   :  { %v26_v6 = vld [vmem:[%s1744_s0 + $0x60] sm:$0xff]  ;;  %v17_v7 = vld [vmem:[%s1744_s0 + $0x18] sm:$0xff]  ;;  %v16_v8 = vld [vmem:[%s1744_s0 + $0x10] sm:$0xff]  ;;  %s1019_s3 = sshll.u32 %s1746_s2, 4  ;;  %s1156_s4 = smov 128   ;;  %s1020_s3 = int_to_ptr.hbm [resolvable:$true] %s1019_s3 }
   0x6   :  { %v28_v9 = vld [vmem:[%s1744_s0 + $0x70] sm:$0xff]  ;;  %v30_v10 = vld [vmem:[%s1744_s0 + $0x80] sm:$0xff]  ;;  %v29_v11 = vld [vmem:[%s1744_s0 + $0x78] sm:$0xff]  ;;  %v1245_v47 = vand.u32 127, %v12_v45  ;;  %s1157_s5 = smov 8  }
   0x7   :  { %v18_v12 = vld [vmem:[%s1744_s0 + $0x20] sm:$0xff]  ;;  %v20_v13 = vld [vmem:[%s1744_s0 + $0x30] sm:$0xff]  ;;  %v19_v14 = vld [vmem:[%s1744_s0 + $0x28] sm:$0xff] }
   0x8   :  { %v31_v15 = vld [vmem:[%s1744_s0 + $0x88] sm:$0xff]  ;;  %v33_v16 = vld [vmem:[%s1744_s0 + $0x98] sm:$0xff]  ;;  %v32_v17 = vld [vmem:[%s1744_s0 + $0x90] sm:$0xff] }
   0x9   :  { %v21_v18 = vld [vmem:[%s1744_s0 + $0x38] sm:$0xff]  ;;  %v22_v19 = vld [vmem:[%s1744_s0 + $0x40] sm:$0xff]  ;;  %v23_v20 = vld [vmem:[%s1744_s0 + $0x48] sm:$0xff] }
   0xa   :  { %74 = vperm.xlu2 %1126, %v27_v4   ;;  %v157_v21 = vld [vmem:[%s1745_s1 + $0x18] sm:$0xff]  ;;  %v156_v23 = vld [vmem:[%s1745_s1 + $0x10] sm:$0xff]  ;;  %v155_v26 = vld [vmem:[%s1745_s1 + $0x8] sm:$0xff] }
   0xb   :  { %68 = vperm.xlu0 %1124, %v25_v5   ;;  %71 = vperm.xlu1 %1125, %v26_v6   ;;  %v231_v22 = vand.u32 4294901760, %v157_v21  ;;  %v233_v25 = vand.u32 4294901760, %v156_v23  ;;  %v235_v29 = vand.u32 4294901760, %v155_v26  ;;  %v154_v30 = vld [vmem:[%s1745_s1] sm:$0xff]  ;;  %s1155_s1 = smov [#allocation2]  }
   0xc   :  { %v237_v34 = vand.u32 4294901760, %v154_v30  ;;  %s1017_s28 = sshll.u32 %s1155_s1, 4  ;;  %s1018_s28 = int_to_ptr.vmem [resolvable:$true] %s1017_s28 }
   0xd   :  { %v413_v24 = vsub.f32 %v157_v21, %v231_v22  ;;  %232 = vmatpush.msra.mxu0 %v231_v22  ;;  %1111 = vmatpush.msra.mxu2 %v231_v22  ;;  %v419_v28 = vsub.f32 %v156_v23, %v233_v25  ;;  %v425_v33 = vsub.f32 %v155_v26, %v235_v29 }
   0xe   :  { %v431_v38 = vsub.f32 %v154_v30, %v237_v34 }
   0xf   :  { %v414_v27 = vand.u32 4294901760, %v413_v24  ;;  %234 = vmatpush.msra.mxu0 %v233_v25  ;;  %1112 = vmatpush.msra.mxu2 %v233_v25  ;;  %v420_v32 = vand.u32 4294901760, %v419_v28  ;;  %v426_v37 = vand.u32 4294901760, %v425_v33 }
  0x10   :  { %v432_v41 = vand.u32 4294901760, %v431_v38 }
  0x11   :  { %v415_v31 = vsub.f32 %v413_v24, %v414_v27  ;;  %236 = vmatpush.msra.mxu0 %v235_v29  ;;  %1113 = vmatpush.msra.mxu2 %v235_v29  ;;  %v421_v36 = vsub.f32 %v419_v28, %v420_v32  ;;  %v427_v40 = vsub.f32 %v425_v33, %v426_v37 }
  0x12   :  { %44 = vperm.xlu2 %1126, %v17_v7   ;;  %v433_v43 = vsub.f32 %v431_v38, %v432_v41 }
  0x13   :  { %41 = vperm.xlu0 %1124, %v16_v8   ;;  %77 = vperm.xlu1 %1125, %v28_v9   ;;  %v416_v35 = vand.u32 4294901760, %v415_v31  ;;  %v422_v39 = vand.u32 4294901760, %v421_v36  ;;  %v428_v42 = vand.u32 4294901760, %v427_v40 }
  0x14   :  { %238 = vmatpush.msra.mxu0 %v237_v34  ;;  %1114 = vmatpush.msra.mxu2 %v237_v34  ;;  %v434_v44 = vand.u32 4294901760, %v433_v43 }
  0x15   :  { %417 = vmatpush.msra.mxu1 %v416_v35  ;;  %1115 = vmatpush.msra.mxu3 %v416_v35 }
  0x16   :  { %531 = vmatpush.msrb.mxu2 %v413_v24  ;;  %798 = vmatpush.msrb.mxu0 %v414_v27 }
  0x17   :  { %423 = vmatpush.msra.mxu1 %v422_v39  ;;  %1116 = vmatpush.msra.mxu3 %v422_v39 }
  0x18   :  { %534 = vmatpush.msrb.mxu2 %v419_v28  ;;  %802 = vmatpush.msrb.mxu0 %v420_v32 }
  0x19   :  { %429 = vmatpush.msra.mxu1 %v428_v42  ;;  %1117 = vmatpush.msra.mxu3 %v428_v42 }
  0x1a   :  { %83 = vperm.xlu2 %1126, %v30_v10   ;;  %537 = vmatpush.msrb.mxu2 %v425_v33 }
  0x1b   :  { %80 = vperm.xlu0 %1124, %v29_v11   ;;  %47 = vperm.xlu1 %1125, %v18_v12  }
  0x1c   :  { %806 = vmatpush.msrb.mxu0 %v426_v37  ;;  %540 = vmatpush.msrb.mxu2 %v431_v38 }
  0x1d   :  { %435 = vmatpush.msra.mxu1 %v434_v44  ;;  %1118 = vmatpush.msra.mxu3 %v434_v44 }
  0x1e   :  { %810 = vmatpush.msrb.mxu0 %v432_v41 }
  0x1f   :  { %655 = vmatpush.msrb.mxu3 %v231_v22  ;;  %905 = vmatpush.msrb.mxu1 %v231_v22 }
  0x21   :  { %657 = vmatpush.msrb.mxu3 %v233_v25  ;;  %907 = vmatpush.msrb.mxu1 %v233_v25 }
  0x22   :  { %53 = vperm.xlu2 %1126, %v20_v13  }
  0x23   :  { %50 = vperm.xlu0 %1124, %v19_v14   ;;  %86 = vperm.xlu1 %1125, %v31_v15  }
  0x24   :  { %659 = vmatpush.msrb.mxu3 %v235_v29  ;;  %909 = vmatpush.msrb.mxu1 %v235_v29 }
  0x26   :  { %661 = vmatpush.msrb.mxu3 %v237_v34  ;;  %911 = vmatpush.msrb.mxu1 %v237_v34 }
  0x2a   :  { %92 = vperm.xlu2 %1126, %v33_v16  }
  0x2b   :  { %89 = vperm.xlu0 %1124, %v32_v17   ;;  %56 = vperm.xlu1 %1125, %v21_v18  }
  0x33   :  { %59 = vperm.xlu0 %1124, %v22_v19   ;;  %62 = vperm.xlu1 %1125, %v23_v20  }
  0x5c   :  { %v39_v46 = vpop.permute.xlu2 %38 }
  0x5d   :  { %vm95_vm0 = vcmp.eq.s32.totalorder %v1245_v47, %v39_v46 }
  0x5e   :  { %v1249_v49 = vsel %vm95_vm0, 1.0, %v1154_v48 }
  0x5f   :  { %v163_v52 = vsel %vm158_vm1, %v1249_v49, 0 }
  0x60   :  { %v1269_v58 = vsub.f32 %v163_v52, %v163_v52 }
  0x62   :  { %v249_v3 = vand.u32 4294901760, %v1269_v58 }
  0x64   :  { %v75_v53 = vpop.permute.xlu2 %74  ;;  %v250_v12 = vsub.f32 %v1269_v58, %v249_v3 }
  0x65   :  { %vm107_vm7 = vcmp.eq.s32.totalorder %v1245_v47, %v75_v53 }
  0x66   :  { %v251_v18 = vand.u32 4294901760, %v250_v12  ;;  %v1317_v20 = vsel %vm107_vm7, 1.0, %v1154_v48 }
  0x67   :  { %v199_v26 = vsel %vm158_vm1, %v1317_v20, 0 }
  0x68   :  { %v1340_v30 = vsub.f32 %v199_v26, %v199_v26 }
  0x6a   :  { %v345_v42 = vand.u32 4294901760, %v1340_v30 }
  0x6c   :  { %v45_v9 = vpop.permute.xlu2 %44 }
  0x6d   :  { %vm97_vm6 = vcmp.eq.s32.totalorder %v1245_v47, %v45_v9 }
  0x6e   :  { %v1311_v15 = vsel %vm97_vm6, 1.0, %v1154_v48 }
  0x6f   :  { %v169_v23 = vsel %vm158_vm1, %v1311_v15, 0 }
  0x70   :  { %v1336_v28 = vsub.f32 %v169_v23, %v169_v23 }
  0x72   :  { %v265_v39 = vand.u32 4294901760, %v1336_v28 }
  0x74   :  { %v84_v36 = vpop.permute.xlu2 %83  ;;  %v266_v45 = vsub.f32 %v1336_v28, %v265_v39 }
  0x75   :  { %v66_v50 = vpop.permute.xlu0 %65  ;;  %v36_v51 = vpop.permute.xlu1 %35  ;;  %vm110_vm14 = vcmp.eq.s32.totalorder %v1245_v47, %v84_v36 }
  0x76   :  { %vm104_vm2 = vcmp.eq.s32.totalorder %v1245_v47, %v66_v50  ;;  %vm94_vm3 = vcmp.eq.s32.totalorder %v1245_v47, %v36_v51  ;;  %v346_v50 = vsub.f32 %v1340_v30, %v345_v42 }
  0x77   :  { %v1256_v54 = vsel %vm104_vm2, 1.0, %v1154_v48  ;;  %v1259_v55 = vsel %vm94_vm3, 1.0, %v1154_v48 }
  0x78   :  { %v190_v56 = vsel %vm158_vm1, %v1256_v54, 0  ;;  %v160_v57 = vsel %vm158_vm1, %v1259_v55, 0  ;;  %1051 = vmatmul.msk.f32.vlgmr.msra.gmra.mxu1 %vm158_vm1, %v1259_v55  ;;  %1061 = vmatmul.msk.f32.vlgmr.msra.gmra.mxu3 %vm158_vm1, %v1256_v54 }
  0x79   :  { %v1271_v59 = vsub.f32 %v190_v56, %v190_v56  ;;  %v1273_v60 = vsub.f32 %v160_v57, %v160_v57  ;;  %v267_v57 = vand.u32 4294901760, %v266_v45 }
  0x7b   :  { %v241_v61 = vand.u32 4294901760, %v1273_v60  ;;  %v321_v62 = vand.u32 4294901760, %v1271_v59 }
  0x7d   :  { %v69_v63 = vpop.permute.xlu0 %68  ;;  %v72_v0 = vpop.permute.xlu1 %71  ;;  %v242_v1 = vsub.f32 %v1273_v60, %v241_v61  ;;  %v322_v2 = vsub.f32 %v1271_v59, %v321_v62 }
  0x7e   :  { %vm105_vm4 = vcmp.eq.s32.totalorder %v1245_v47, %v69_v63  ;;  %vm106_vm5 = vcmp.eq.s32.totalorder %v1245_v47, %v72_v0 }
  0x7f   :  { %v1287_v4 = vsel %vm105_vm4, 1.0, %v1154_v48  ;;  %v1290_v5 = vsel %vm106_vm5, 1.0, %v1154_v48  ;;  %v243_v6 = vand.u32 4294901760, %v242_v1  ;;  %v323_v8 = vand.u32 4294901760, %v322_v2 }
  0x80   :  { %v193_v7 = vsel %vm158_vm1, %v1287_v4, 0  ;;  %1052 = vmatmul.msk.f32.gmra.mxu1 %vm158_vm1, %v1249_v49  ;;  %1062 = vmatmul.msk.f32.gmra.mxu3 %vm158_vm1, %v1287_v4  ;;  %v196_v11 = vsel %vm158_vm1, %v1290_v5, 0  ;;  %v347_v1 = vand.u32 4294901760, %v346_v50 }
  0x81   :  { %v1298_v10 = vsub.f32 %v193_v7, %v193_v7  ;;  %244 = vmatmul.f32.vlgmr.msra.gmra.mxu0 %v243_v6  ;;  %324 = vmatmul.f32.vlgmr.msra.gmra.mxu2 %v323_v8  ;;  %v1308_v14 = vsub.f32 %v196_v11, %v196_v11  ;;  %v54_v6 = vpop.permute.xlu2 %53 }
  0x82   :  { %vm100_vm13 = vcmp.eq.s32.totalorder %v1245_v47, %v54_v6 }
  0x83   :  { %v329_v13 = vand.u32 4294901760, %v1298_v10  ;;  %v337_v25 = vand.u32 4294901760, %v1308_v14 }
  0x85   :  { %v42_v16 = vpop.permute.xlu0 %41  ;;  %v78_v17 = vpop.permute.xlu1 %77  ;;  %v330_v19 = vsub.f32 %v1298_v10, %v329_v13  ;;  %v338_v31 = vsub.f32 %v1308_v14, %v337_v25 }
  0x86   :  { %vm96_vm8 = vcmp.eq.s32.totalorder %v1245_v47, %v42_v16  ;;  %vm108_vm9 = vcmp.eq.s32.totalorder %v1245_v47, %v78_v17  ;;  %v1406_v16 = vsel %vm100_vm13, 1.0, %v1154_v48 }
  0x87   :  { %v1321_v21 = vsel %vm96_vm8, 1.0, %v1154_v48  ;;  %v331_v22 = vand.u32 4294901760, %v330_v19  ;;  %v1349_v35 = vsel %vm108_vm9, 1.0, %v1154_v48  ;;  %v339_v41 = vand.u32 4294901760, %v338_v31 }
  0x88   :  { %v166_v24 = vsel %vm158_vm1, %v1321_v21, 0  ;;  %1053 = vmatmul.msk.f32.gmra.mxu1 %vm158_vm1, %v1321_v21  ;;  %1063 = vmatmul.msk.f32.gmra.mxu3 %vm158_vm1, %v1290_v5  ;;  %v202_v43 = vsel %vm158_vm1, %v1349_v35, 0 }
  0x89   :  { %v1334_v27 = vsub.f32 %v166_v24, %v166_v24  ;;  %252 = vmatmul.f32.gmra.mxu0 %v251_v18  ;;  %332 = vmatmul.f32.gmra.mxu2 %v331_v22  ;;  %v1371_v46 = vsub.f32 %v202_v43, %v202_v43  ;;  %v1409_v18 = vsel %vm110_vm14, 1.0, %v1154_v48  ;;  %v178_v24 = vsel %vm158_vm1, %v1406_v16, 0 }
  0x8b   :  { %v257_v29 = vand.u32 4294901760, %v1334_v27  ;;  %v353_v2 = vand.u32 4294901760, %v1371_v46 }
  0x8d   :  { %v81_v32 = vpop.permute.xlu0 %80  ;;  %v48_v33 = vpop.permute.xlu1 %47  ;;  %v258_v34 = vsub.f32 %v1334_v27, %v257_v29  ;;  %v354_v12 = vsub.f32 %v1371_v46, %v353_v2 }
  0x8e   :  { %vm98_vm10 = vcmp.eq.s32.totalorder %v1245_v47, %v48_v33  ;;  %vm109_vm11 = vcmp.eq.s32.totalorder %v1245_v47, %v81_v32  ;;  %v208_v32 = vsel %vm158_vm1, %v1409_v18, 0  ;;  %v1422_v33 = vsub.f32 %v178_v24, %v178_v24 }
  0x8f   :  { %v1353_v37 = vsel %vm98_vm10, 1.0, %v1154_v48  ;;  %v259_v38 = vand.u32 4294901760, %v258_v34  ;;  %v1377_v53 = vsel %vm109_vm11, 1.0, %v1154_v48  ;;  %v355_v26 = vand.u32 4294901760, %v354_v12 }
  0x90   :  { %v172_v40 = vsel %vm158_vm1, %v1353_v37, 0  ;;  %1054 = vmatmul.msk.f32.gmra.mxu1 %vm158_vm1, %v1311_v15  ;;  %1064 = vmatmul.msk.f32.gmra.mxu3 %vm158_vm1, %v1317_v20  ;;  %v205_v7 = vsel %vm158_vm1, %v1377_v53, 0  ;;  %v1428_v36 = vsub.f32 %v208_v32, %v208_v32  ;;  %v289_v50 = vand.u32 4294901760, %v1422_v33 }
  0x91   :  { %260 = vmatmul.f32.gmra.mxu0 %v259_v38  ;;  %340 = vmatmul.f32.gmra.mxu2 %v339_v41  ;;  %v1366_v44 = vsub.f32 %v172_v40, %v172_v40  ;;  %v1400_v11 = vsub.f32 %v205_v7, %v205_v7 }
  0x92   :  { %v290_v6 = vsub.f32 %v1422_v33, %v289_v50 }
  0x93   :  { %v273_v63 = vand.u32 4294901760, %v1366_v44  ;;  %v361_v31 = vand.u32 4294901760, %v1400_v11 }
  0x95   :  { %v51_v51 = vpop.permute.xlu0 %50  ;;  %v87_v52 = vpop.permute.xlu1 %86  ;;  %v274_v9 = vsub.f32 %v1366_v44, %v273_v63  ;;  %v362_v38 = vsub.f32 %v1400_v11, %v361_v31 }
  0x96   :  { %vm99_vm12 = vcmp.eq.s32.totalorder %v1245_v47, %v51_v51  ;;  %vm111_vm0 = vcmp.eq.s32.totalorder %v1245_v47, %v87_v52 }
  0x97   :  { %v1381_v56 = vsel %vm99_vm12, 1.0, %v1154_v48  ;;  %v275_v22 = vand.u32 4294901760, %v274_v9  ;;  %v1437_v41 = vsel %vm111_vm0, 1.0, %v1154_v48  ;;  %v363_v52 = vand.u32 4294901760, %v362_v38 }
  0x98   :  { %v175_v0 = vsel %vm158_vm1, %v1381_v56, 0  ;;  %1055 = vmatmul.msk.f32.gmra.mxu1 %vm158_vm1, %v1353_v37  ;;  %1065 = vmatmul.msk.f32.gmra.mxu3 %vm158_vm1, %v1349_v35 }
  0x99   :  { %268 = vmatmul.f32.gmra.mxu0 %v267_v57  ;;  %348 = vmatmul.f32.gmra.mxu2 %v347_v1  ;;  %v1395_v8 = vsub.f32 %v175_v0, %v175_v0  ;;  %v1748_v57 = vand.u32 4294901760, %v1428_v36  ;;  %v211_v0 = vsel %vm158_vm1, %v1437_v41, 0 }
  0x9a   :  { %v1456_v7 = vsub.f32 %v211_v0, %v211_v0 }
  0x9b   :  { %v281_v23 = vand.u32 4294901760, %v1395_v8  ;;  %v370_v9 = vsub.f32 %v1428_v36, %v1748_v57 }
  0x9c   :  { %v1747_v38 = vand.u32 4294901760, %v1456_v7 }
  0x9d   :  { %v90_v17 = vpop.permute.xlu0 %89  ;;  %v57_v19 = vpop.permute.xlu1 %56  ;;  %v282_v34 = vsub.f32 %v1395_v8, %v281_v23 }
  0x9e   :  { %vm101_vm15 = vcmp.eq.s32.totalorder %v1245_v47, %v57_v19  ;;  %vm112_vm3 = vcmp.eq.s32.totalorder %v1245_v47, %v90_v17  ;;  %v291_v17 = vand.u32 4294901760, %v290_v6  ;;  %v378_v0 = vsub.f32 %v1456_v7, %v1747_v38 }
  0x9f   :  { %v1434_v40 = vsel %vm101_vm15, 1.0, %v1154_v48  ;;  %v283_v45 = vand.u32 4294901760, %v282_v34  ;;  %v1465_v19 = vsel %vm112_vm3, 1.0, %v1154_v48  ;;  %v371_v34 = vand.u32 4294901760, %v370_v9 }
  0xa0   :  { %1056 = vmatmul.msk.f32.gmra.mxu1 %vm158_vm1, %v1381_v56  ;;  %1066 = vmatmul.msk.f32.gmra.mxu3 %vm158_vm1, %v1377_v53  ;;  %v181_v51 = vsel %vm158_vm1, %v1434_v40, 0 }
  0xa1   :  { %276 = vmatmul.f32.gmra.mxu0 %v275_v22  ;;  %356 = vmatmul.f32.gmra.mxu2 %v355_v26  ;;  %v1451_v1 = vsub.f32 %v181_v51, %v181_v51  ;;  %v93_v26 = vpop.permute.xlu2 %92 }
  0xa2   :  { %vm113_vm5 = vcmp.eq.s32.totalorder %v1245_v47, %v93_v26  ;;  %v379_v26 = vand.u32 4294901760, %v378_v0 }
  0xa3   :  { %v297_v24 = vand.u32 4294901760, %v1451_v1  ;;  %v1493_v9 = vsel %vm113_vm5, 1.0, %v1154_v48 }
  0xa5   :  { %v60_v43 = vpop.permute.xlu0 %59  ;;  %v63_v22 = vpop.permute.xlu1 %62  ;;  %v298_v51 = vsub.f32 %v1451_v1, %v297_v24 }
  0xa6   :  { %vm102_vm2 = vcmp.eq.s32.totalorder %v1245_v47, %v60_v43  ;;  %v214_v43 = vsel %vm158_vm1, %v1465_v19, 0  ;;  %vm103_vm4 = vcmp.eq.s32.totalorder %v1245_v47, %v63_v22 }
  0xa7   :  { %v1462_v12 = vsel %vm102_vm2, 1.0, %v1154_v48  ;;  %v1490_v6 = vsel %vm103_vm4, 1.0, %v1154_v48  ;;  %v299_v22 = vand.u32 4294901760, %v298_v51 }
  0xa8   :  { %1057 = vmatmul.msk.f32.gmra.mxu1 %vm158_vm1, %v1406_v16  ;;  %1067 = vmatmul.msk.f32.gmra.mxu3 %vm158_vm1, %v1409_v18  ;;  %v184_v32 = vsel %vm158_vm1, %v1462_v12, 0 }
  0xa9   :  { %284 = vmatmul.f32.gmra.mxu0 %v283_v45  ;;  %364 = vmatmul.f32.gmra.mxu2 %v363_v52  ;;  %v1479_v45 = vsub.f32 %v184_v32, %v184_v32  ;;  %v1484_v52 = vsub.f32 %v214_v43, %v214_v43 }
  0xab   :  { %v305_v47 = vand.u32 4294901760, %v1479_v45  ;;  %v1749_v32 = vand.u32 4294901760, %v1484_v52 }
  0xad   :  { %v306_v43 = vsub.f32 %v1479_v45, %v305_v47  ;;  %v386_v38 = vsub.f32 %v1484_v52, %v1749_v32 }
  0xaf   :  { %v307_v0 = vand.u32 4294901760, %v306_v43 }
  0xb0   :  { %1058 = vmatmul.msk.f32.gmra.mxu1 %vm158_vm1, %v1434_v40  ;;  %1068 = vmatmul.msk.f32.gmra.mxu3 %vm158_vm1, %v1437_v41 }
  0xb1   :  { %292 = vmatmul.f32.gmra.mxu0 %v291_v17  ;;  %372 = vmatmul.f32.gmra.mxu2 %v371_v34  ;;  %v187_v17 = vsel %vm158_vm1, %v1490_v6, 0  ;;  %v217_v34 = vsel %vm158_vm1, %v1493_v9, 0 }
  0xb2   :  { %v1505_v48 = vsub.f32 %v187_v17, %v187_v17  ;;  %v1510_v51 = vsub.f32 %v217_v34, %v217_v34 }
  0xb4   :  { %v313_v57 = vand.u32 4294901760, %v1505_v48  ;;  %v393_v17 = vand.u32 4294901760, %v1510_v51 }
  0xb6   :  { %v394_v34 = vsub.f32 %v1510_v51, %v393_v17 }
  0xb8   :  { %1059 = vmatmul.msk.f32.gmra.mxu1 %vm158_vm1, %v1462_v12  ;;  %1069 = vmatmul.msk.f32.gmra.mxu3 %vm158_vm1, %v1465_v19  ;;  %v395_v32 = vand.u32 4294901760, %v394_v34 }
  0xb9   :  { %300 = vmatmul.f32.gmra.mxu0 %v299_v22  ;;  %380 = vmatmul.f32.gmra.mxu2 %v379_v26  ;;  %v387_v22 = vand.u32 4294901760, %v386_v38  ;;  %v314_v26 = vsub.f32 %v1505_v48, %v313_v57 }
  0xbb   :  { %v315_v43 = vand.u32 4294901760, %v314_v26 }
  0xc0   :  { %1060 = vmatmul.msk.f32.gmra.mxu1 %vm158_vm1, %v1490_v6  ;;  %1070 = vmatmul.msk.f32.gmra.mxu3 %vm158_vm1, %v1493_v9 }
  0xc1   :  { %308 = vmatmul.f32.gmra.mxu0 %v307_v0  ;;  %388 = vmatmul.f32.gmra.mxu2 %v387_v22 }
  0xc8   :  { %665 = vmatmul.f32.vlgmr.msrb.gmra.mxu3 %v241_v61  ;;  %1091 = vmatmul.msk.f32.vlgmr.msrb.gmra.mxu1 %vm158_vm1, %v1259_v55 }
  0xc9   :  { %316 = vmatmul.f32.gmra.mxu0 %v315_v43  ;;  %396 = vmatmul.f32.gmra.mxu2 %v395_v32 }
  0xd0   :  { %671 = vmatmul.f32.gmra.mxu3 %v249_v3  ;;  %1092 = vmatmul.msk.f32.gmra.mxu1 %vm158_vm1, %v1249_v49 }
  0xd1   :  { %1071 = vmatmul.msk.f32.vlgmr.msrb.gmra.mxu0 %vm158_vm1, %v1259_v55  ;;  %543 = vmatmul.f32.vlgmr.msrb.gmra.mxu2 %v1273_v60 }
  0xd8   :  { %677 = vmatmul.f32.gmra.mxu3 %v257_v29  ;;  %1093 = vmatmul.msk.f32.gmra.mxu1 %vm158_vm1, %v1321_v21 }
  0xd9   :  { %1072 = vmatmul.msk.f32.gmra.mxu0 %vm158_vm1, %v1249_v49  ;;  %548 = vmatmul.f32.gmra.mxu2 %v1269_v58 }
  0xe0   :  { %683 = vmatmul.f32.gmra.mxu3 %v265_v39  ;;  %1094 = vmatmul.msk.f32.gmra.mxu1 %vm158_vm1, %v1311_v15 }
  0xe1   :  { %1073 = vmatmul.msk.f32.gmra.mxu0 %vm158_vm1, %v1321_v21  ;;  %553 = vmatmul.f32.gmra.mxu2 %v1334_v27 }
  0xe8   :  { %689 = vmatmul.f32.gmra.mxu3 %v273_v63  ;;  %1095 = vmatmul.msk.f32.gmra.mxu1 %vm158_vm1, %v1353_v37 }
  0xe9   :  { %1074 = vmatmul.msk.f32.gmra.mxu0 %vm158_vm1, %v1311_v15  ;;  %558 = vmatmul.f32.gmra.mxu2 %v1336_v28 }
  0xf0   :  { %695 = vmatmul.f32.gmra.mxu3 %v281_v23  ;;  %1096 = vmatmul.msk.f32.gmra.mxu1 %vm158_vm1, %v1381_v56 }
  0xf1   :  { %1075 = vmatmul.msk.f32.gmra.mxu0 %vm158_vm1, %v1353_v37  ;;  %563 = vmatmul.f32.gmra.mxu2 %v1366_v44 }
  0xf5   :  { %v1564_v49 = vpop.f32.mrf.mxu1 }
  0xf8   :  { %701 = vmatmul.f32.gmra.mxu3 %v289_v50  ;;  %1097 = vmatmul.msk.f32.gmra.mxu1 %vm158_vm1, %v1406_v16 }
  0xf9   :  { %1076 = vmatmul.msk.f32.gmra.mxu0 %vm158_vm1, %v1381_v56  ;;  %568 = vmatmul.f32.gmra.mxu2 %v1395_v8 }
  0xfb   :  { %v478_v55 = vpop.f32.mrf.mxu3 }
  0xfd   :  { %v1573_v58 = vpop.f32.mrf.mxu1 }
  0xfe   :  { %v1575_v60 = vpop.f32.mrf.mxu0 }
 0x100   :  { %707 = vmatmul.f32.gmra.mxu3 %v297_v24  ;;  %1098 = vmatmul.msk.f32.gmra.mxu1 %vm158_vm1, %v1434_v40 }
 0x101   :  { %1077 = vmatmul.msk.f32.gmra.mxu0 %vm158_vm1, %v1406_v16  ;;  %573 = vmatmul.f32.gmra.mxu2 %v1422_v33 }
 0x103   :  { %v482_v61 = vpop.f32.mrf.mxu3 }
 0x104   :  { %v325_v3 = vpop.f32.mrf.mxu2 }
 0x105   :  { %v1584_v15 = vpop.f32.mrf.mxu1  ;;  %v1586_v21 = vadd.f32 %v478_v55, %v325_v3 }
 0x106   :  { %v1588_v27 = vpop.f32.mrf.mxu0 }
 0x108   :  { %713 = vmatmul.f32.gmra.mxu3 %v305_v47  ;;  %1099 = vmatmul.msk.f32.gmra.mxu1 %vm158_vm1, %v1462_v12 }
 0x109   :  { %1078 = vmatmul.msk.f32.gmra.mxu0 %vm158_vm1, %v1434_v40  ;;  %578 = vmatmul.f32.gmra.mxu2 %v1451_v1 }
 0x10b   :  { %v486_v28 = vpop.f32.mrf.mxu3 }
 0x10c   :  { %v333_v29 = vpop.f32.mrf.mxu2 }
 0x10d   :  { %v1597_v37 = vpop.f32.mrf.mxu1  ;;  %v1599_v39 = vadd.f32 %v482_v61, %v333_v29 }
 0x10e   :  { %v1601_v44 = vpop.f32.mrf.mxu0 }
 0x110   :  { %719 = vmatmul.f32.gmra.mxu3 %v313_v57  ;;  %1100 = vmatmul.msk.f32.gmra.mxu1 %vm158_vm1, %v1490_v6 }
 0x111   :  { %1079 = vmatmul.msk.f32.gmra.mxu0 %vm158_vm1, %v1462_v12  ;;  %583 = vmatmul.f32.gmra.mxu2 %v1479_v45 }
 0x113   :  { %v490_v56 = vpop.f32.mrf.mxu3 }
 0x114   :  { %v341_v63 = vpop.f32.mrf.mxu2 }
 0x115   :  { %v1608_v8 = vpop.f32.mrf.mxu1  ;;  %v1610_v16 = vadd.f32 %v486_v28, %v341_v63  ;;  %v1750_v28 = vand.u32 4294901760, %v1428_v36  ;;  %v1751_v63 = vand.u32 4294901760, %v1456_v7 }
 0x116   :  { %v1612_v23 = vpop.f32.mrf.mxu0 }
 0x118   :  { %725 = vmatmul.f32.gmra.mxu3 %v321_v62  ;;  %1101 = vmatmul.msk.f32.gmra.mxu1 %vm158_vm1, %v1256_v54 }
 0x119   :  { %1080 = vmatmul.msk.f32.gmra.mxu0 %vm158_vm1, %v1490_v6  ;;  %588 = vmatmul.f32.gmra.mxu2 %v1505_v48 }
 0x11b   :  { %v494_v33 = vpop.f32.mrf.mxu3 }
 0x11c   :  { %v349_v40 = vpop.f32.mrf.mxu2 }
 0x11d   :  { %v1621_v50 = vpop.f32.mrf.mxu1  ;;  %v1623_v57 = vadd.f32 %v490_v56, %v349_v40 }
 0x11e   :  { %v1625_v1 = vpop.f32.mrf.mxu0 }
 0x120   :  { %731 = vmatmul.f32.gmra.mxu3 %v329_v13  ;;  %1102 = vmatmul.msk.f32.gmra.mxu1 %vm158_vm1, %v1287_v4 }
 0x121   :  { %1081 = vmatmul.msk.f32.gmra.mxu0 %vm158_vm1, %v1256_v54  ;;  %593 = vmatmul.f32.gmra.mxu2 %v1271_v59 }
 0x123   :  { %v498_v62 = vpop.f32.mrf.mxu3 }
 0x124   :  { %v357_v12 = vpop.f32.mrf.mxu2 }
 0x125   :  { %v462_v24 = vpop.f32.mrf.mxu1  ;;  %v1634_v38 = vadd.f32 %v494_v33, %v357_v12 }
 0x126   :  { %v1636_v45 = vpop.f32.mrf.mxu0 }
 0x128   :  { %737 = vmatmul.f32.gmra.mxu3 %v337_v25  ;;  %1103 = vmatmul.msk.f32.gmra.mxu1 %vm158_vm1, %v1290_v5 }
 0x129   :  { %1082 = vmatmul.msk.f32.gmra.mxu0 %vm158_vm1, %v1287_v4  ;;  %598 = vmatmul.f32.gmra.mxu2 %v1298_v10 }
 0x12b   :  { %v502_v54 = vpop.f32.mrf.mxu3 }
 0x12c   :  { %v365_v59 = vpop.f32.mrf.mxu2 }
 0x12d   :  { %v466_v13 = vpop.f32.mrf.mxu1  ;;  %v1645_v6 = vadd.f32 %v498_v62, %v365_v59 }
 0x12e   :  { %v293_v47 = vpop.f32.mrf.mxu0 }
 0x12f   :  { %v1647_v32 = vadd.f32 %v462_v24, %v293_v47 }
 0x130   :  { %743 = vmatmul.f32.gmra.mxu3 %v345_v42  ;;  %1104 = vmatmul.msk.f32.gmra.mxu1 %vm158_vm1, %v1317_v20 }
 0x131   :  { %1083 = vmatmul.msk.f32.gmra.mxu0 %vm158_vm1, %v1290_v5  ;;  %603 = vmatmul.f32.gmra.mxu2 %v1308_v14 }
 0x133   :  { %v506_v4 = vpop.f32.mrf.mxu3 }
 0x134   :  { %v373_v10 = vpop.f32.mrf.mxu2 }
 0x135   :  { %v470_v25 = vpop.f32.mrf.mxu1  ;;  %v1656_v48 = vadd.f32 %v502_v54, %v373_v10  ;;  %v1752_v54 = vand.u32 4294901760, %v1484_v52 }
 0x136   :  { %v301_v0 = vpop.f32.mrf.mxu0 }
 0x137   :  { %v1658_v22 = vadd.f32 %v466_v13, %v301_v0 }
 0x138   :  { %749 = vmatmul.f32.gmra.mxu3 %v353_v2  ;;  %1105 = vmatmul.msk.f32.gmra.mxu1 %vm158_vm1, %v1349_v35 }
 0x139   :  { %1084 = vmatmul.msk.f32.gmra.mxu0 %vm158_vm1, %v1317_v20  ;;  %608 = vmatmul.f32.gmra.mxu2 %v1340_v30 }
 0x13b   :  { %v510_v5 = vpop.f32.mrf.mxu3 }
 0x13c   :  { %v381_v14 = vpop.f32.mrf.mxu2 }
 0x13d   :  { %v474_v42 = vpop.f32.mrf.mxu1  ;;  %v1667_v26 = vadd.f32 %v506_v4, %v381_v14 }
 0x13e   :  { %v309_v34 = vpop.f32.mrf.mxu0 }
 0x13f   :  { %v1669_v43 = vadd.f32 %v470_v25, %v309_v34 }
 0x140   :  { %755 = vmatmul.f32.gmra.mxu3 %v361_v31  ;;  %1106 = vmatmul.msk.f32.gmra.mxu1 %vm158_vm1, %v1377_v53 }
 0x141   :  { %1085 = vmatmul.msk.f32.gmra.mxu0 %vm158_vm1, %v1349_v35  ;;  %613 = vmatmul.f32.gmra.mxu2 %v1371_v46 }
 0x143   :  { %v514_v20 = vpop.f32.mrf.mxu3 }
 0x144   :  { %v389_v30 = vpop.f32.mrf.mxu2 }
 0x145   :  { %v914_v2 = vpop.f32.mrf.mxu1  ;;  %v1678_v55 = vadd.f32 %v510_v5, %v389_v30 }
 0x146   :  { %v317_v61 = vpop.f32.mrf.mxu0 }
 0x147   :  { %v1680_v3 = vadd.f32 %v474_v42, %v317_v61 }
 0x148   :  { %761 = vmatmul.f32.gmra.mxu3 %v1750_v28  ;;  %1107 = vmatmul.msk.f32.gmra.mxu1 %vm158_vm1, %v1409_v18 }
 0x149   :  { %1086 = vmatmul.msk.f32.gmra.mxu0 %vm158_vm1, %v1377_v53  ;;  %618 = vmatmul.f32.gmra.mxu2 %v1400_v11  ;;  %v439_v11 = vadd.f32 %v1564_v49, %v1575_v60  ;;  %v443_v49 = vadd.f32 %v1573_v58, %v1588_v27  ;;  %v447_v58 = vadd.f32 %v1584_v15, %v1601_v44 }
 0x14b   :  { %v666_v35 = vpop.f32.mrf.mxu3 }
 0x14c   :  { %v397_v46 = vpop.f32.mrf.mxu2 }
 0x14d   :  { %v918_v31 = vpop.f32.mrf.mxu1  ;;  %v1689_v29 = vadd.f32 %v514_v20, %v397_v46 }
 0x14e   :  { %v813_v56 = vpop.f32.mrf.mxu0 }
 0x150   :  { %767 = vmatmul.f32.gmra.mxu3 %v1751_v63  ;;  %1108 = vmatmul.msk.f32.gmra.mxu1 %vm158_vm1, %v1437_v41 }
 0x151   :  { %1087 = vmatmul.msk.f32.gmra.mxu0 %vm158_vm1, %v1409_v18  ;;  %623 = vmatmul.f32.gmra.mxu2 %v1428_v36 }
 0x153   :  { %v672_v53 = vpop.f32.mrf.mxu3 }
 0x154   :  { %v544_v33 = vpop.f32.mrf.mxu2 }
 0x155   :  { %v922_v40 = vpop.f32.mrf.mxu1  ;;  %v545_v62 = vadd.f32 %v544_v33, %v439_v11 }
 0x156   :  { %v817_v12 = vpop.f32.mrf.mxu0 }
 0x157   :  { %v667_v24 = vadd.f32 %v666_v35, %v545_v62  ;;  %v455_v35 = vadd.f32 %v1608_v8, %v1625_v1 }
 0x158   :  { %773 = vmatmul.f32.gmra.mxu3 %v1752_v54  ;;  %1109 = vmatmul.msk.f32.gmra.mxu1 %vm158_vm1, %v1465_v19 }
 0x159   :  { %1088 = vmatmul.msk.f32.gmra.mxu0 %vm158_vm1, %v1437_v41  ;;  %v814_v18 = vadd.f32 %v813_v56, %v667_v24  ;;  %628 = vmatmul.f32.gmra.mxu2 %v1456_v7 }
 0x15b   :  { %v678_v36 = vpop.f32.mrf.mxu3  ;;  %v915_v60 = vadd.f32 %v914_v2, %v814_v18 }
 0x15c   :  { %v549_v59 = vpop.f32.mrf.mxu2 }
 0x15d   :  { %v926_v13 = vpop.f32.mrf.mxu1  ;;  %993 = vst [vmem:[#allocation2] sm:$0xff] %v915_v60  ;;  %v550_v47 = vadd.f32 %v549_v59, %v443_v49 }
 0x15e   :  { %v821_v4 = vpop.f32.mrf.mxu0 }
 0x15f   :  { %v673_v10 = vadd.f32 %v672_v53, %v550_v47  ;;  %v459_v53 = vadd.f32 %v1621_v50, %v1636_v45 }
 0x160   :  { %779 = vmatmul.f32.gmra.mxu3 %v393_v17  ;;  %1110 = vmatmul.msk.f32.gmra.mxu1 %vm158_vm1, %v1493_v9 }
 0x161   :  { %1089 = vmatmul.msk.f32.gmra.mxu0 %vm158_vm1, %v1465_v19  ;;  %v818_v41 = vadd.f32 %v817_v12, %v673_v10  ;;  %633 = vmatmul.f32.gmra.mxu2 %v1484_v52  ;;  %v451_v52 = vadd.f32 %v1597_v37, %v1612_v23 }
 0x163   :  { %v684_v7 = vpop.f32.mrf.mxu3  ;;  %v919_v27 = vadd.f32 %v918_v31, %v818_v41 }
 0x164   :  { %v554_v25 = vpop.f32.mrf.mxu2 }
 0x165   :  { %v930_v0 = vpop.f32.mrf.mxu1  ;;  %994 = vst [vmem:[#allocation2 + $0x8] sm:$0xff] %v919_v27  ;;  %v555_v5 = vadd.f32 %v554_v25, %v447_v58 }
 0x166   :  { %v825_v14 = vpop.f32.mrf.mxu0 }
 0x167   :  { %v679_v17 = vadd.f32 %v678_v36, %v555_v5 }
 0x169   :  { %1090 = vmatmul.msk.f32.gmra.mxu0 %vm158_vm1, %v1493_v9  ;;  %v822_v42 = vadd.f32 %v821_v4, %v679_v17  ;;  %638 = vmatmul.f32.gmra.mxu2 %v1510_v51 }
 0x16b   :  { %v690_v19 = vpop.f32.mrf.mxu3  ;;  %v923_v34 = vadd.f32 %v922_v40, %v822_v42 }
 0x16c   :  { %v559_v20 = vpop.f32.mrf.mxu2 }
 0x16d   :  { %v934_v15 = vpop.f32.mrf.mxu1  ;;  %995 = vst [vmem:[#allocation2 + $0x10] sm:$0xff] %v923_v34  ;;  %v560_v44 = vadd.f32 %v559_v20, %v451_v52 }
 0x16e   :  { %v829_v30 = vpop.f32.mrf.mxu0 }
 0x16f   :  { %v685_v2 = vadd.f32 %v684_v7, %v560_v44 }
 0x171   :  { %v826_v61 = vadd.f32 %v825_v14, %v685_v2 }
 0x173   :  { %v696_v28 = vpop.f32.mrf.mxu3  ;;  %v927_v9 = vadd.f32 %v926_v13, %v826_v61 }
 0x174   :  { %v564_v46 = vpop.f32.mrf.mxu2 }
 0x175   :  { %v938_v31 = vpop.f32.mrf.mxu1  ;;  %996 = vst [vmem:[#allocation2 + $0x18] sm:$0xff] %v927_v9  ;;  %v565_v51 = vadd.f32 %v564_v46, %v455_v35 }
 0x176   :  { %v833_v56 = vpop.f32.mrf.mxu0 }
 0x177   :  { %v691_v63 = vadd.f32 %v690_v19, %v565_v51 }
 0x179   :  { %v830_v37 = vadd.f32 %v829_v30, %v691_v63 }
 0x17b   :  { %v702_v23 = vpop.f32.mrf.mxu3  ;;  %v931_v11 = vadd.f32 %v930_v0, %v830_v37 }
 0x17c   :  { %v569_v33 = vpop.f32.mrf.mxu2 }
 0x17d   :  { %v942_v40 = vpop.f32.mrf.mxu1  ;;  %997 = vst [vmem:[#allocation2 + $0x20] sm:$0xff] %v931_v11  ;;  %v570_v62 = vadd.f32 %v569_v33, %v459_v53 }
 0x17e   :  { %v837_v12 = vpop.f32.mrf.mxu0 }
 0x17f   :  { %v697_v24 = vadd.f32 %v696_v28, %v570_v62 }
 0x181   :  { %v834_v8 = vadd.f32 %v833_v56, %v697_v24 }
 0x183   :  { %v708_v1 = vpop.f32.mrf.mxu3  ;;  %v935_v54 = vadd.f32 %v934_v15, %v834_v8 }
 0x184   :  { %v574_v18 = vpop.f32.mrf.mxu2 }
 0x185   :  { %v946_v36 = vpop.f32.mrf.mxu1  ;;  %998 = vst [vmem:[#allocation2 + $0x28] sm:$0xff] %v935_v54  ;;  %v575_v49 = vadd.f32 %v574_v18, %v1647_v32 }
 0x186   :  { %v841_v60 = vpop.f32.mrf.mxu0 }
 0x187   :  { %v703_v59 = vadd.f32 %v702_v23, %v575_v49 }
 0x189   :  { %v838_v13 = vadd.f32 %v837_v12, %v703_v59 }
 0x18b   :  { %v714_v47 = vpop.f32.mrf.mxu3  ;;  %v939_v50 = vadd.f32 %v938_v31, %v838_v13 }
 0x18c   :  { %v579_v45 = vpop.f32.mrf.mxu2 }
 0x18d   :  { %999 = vst [vmem:[#allocation2 + $0x30] sm:$0xff] %v939_v50  ;;  %v580_v4 = vadd.f32 %v579_v45, %v1658_v22  ;;  %v950_v41 = vpop.f32.mrf.mxu1 }
 0x18e   :  { %v845_v10 = vpop.f32.mrf.mxu0 }
 0x18f   :  { %v709_v7 = vadd.f32 %v708_v1, %v580_v4 }
 0x191   :  { %v842_v58 = vadd.f32 %v841_v60, %v709_v7 }
 0x193   :  { %v720_v27 = vpop.f32.mrf.mxu3  ;;  %v943_v25 = vadd.f32 %v942_v40, %v842_v58 }
 0x194   :  { %v584_v0 = vpop.f32.mrf.mxu2 }
 0x195   :  { %1000 = vst [vmem:[#allocation2 + $0x38] sm:$0xff] %v943_v25  ;;  %v585_v5 = vadd.f32 %v584_v0, %v1669_v43  ;;  %v954_v17 = vpop.f32.mrf.mxu1 }
 0x196   :  { %v849_v32 = vpop.f32.mrf.mxu0 }
 0x197   :  { %v715_v14 = vadd.f32 %v714_v47, %v585_v5 }
 0x199   :  { %v846_v42 = vadd.f32 %v845_v10, %v715_v14 }
 0x19b   :  { %v726_v19 = vpop.f32.mrf.mxu3  ;;  %v947_v52 = vadd.f32 %v946_v36, %v846_v42 }
 0x19c   :  { %v589_v34 = vpop.f32.mrf.mxu2 }
 0x19d   :  { %1001 = vst [vmem:[#allocation2 + $0x40] sm:$0xff] %v947_v52  ;;  %v590_v22 = vadd.f32 %v589_v34, %v1680_v3  ;;  %v958_v30 = vpop.f32.mrf.mxu1 }
 0x19e   :  { %v853_v20 = vpop.f32.mrf.mxu0 }
 0x19f   :  { %v721_v15 = vadd.f32 %v720_v27, %v590_v22 }
 0x1a1   :  { %v850_v44 = vadd.f32 %v849_v32, %v721_v15 }
 0x1a3   :  { %v732_v2 = vpop.f32.mrf.mxu3  ;;  %v951_v61 = vadd.f32 %v950_v41, %v850_v44 }
 0x1a4   :  { %v594_v28 = vpop.f32.mrf.mxu2 }
 0x1a5   :  { %1002 = vst [vmem:[#allocation2 + $0x48] sm:$0xff] %v951_v61  ;;  %v595_v43 = vadd.f32 %v594_v28, %v1586_v21  ;;  %v962_v56 = vpop.f32.mrf.mxu1 }
 0x1a6   :  { %v857_v35 = vpop.f32.mrf.mxu0 }
 0x1a7   :  { %v727_v9 = vadd.f32 %v726_v19, %v595_v43 }
 0x1a9   :  { %v854_v46 = vadd.f32 %v853_v20, %v727_v9 }
 0x1ab   :  { %v738_v31 = vpop.f32.mrf.mxu3  ;;  %v955_v51 = vadd.f32 %v954_v17, %v854_v46 }
 0x1ac   :  { %v599_v63 = vpop.f32.mrf.mxu2 }
 0x1ad   :  { %1003 = vst [vmem:[#allocation2 + $0x50] sm:$0xff] %v955_v51  ;;  %v600_v3 = vadd.f32 %v599_v63, %v1599_v39  ;;  %v966_v12 = vpop.f32.mrf.mxu1 }
 0x1ae   :  { %v861_v37 = vpop.f32.mrf.mxu0 }
 0x1af   :  { %v733_v23 = vadd.f32 %v732_v2, %v600_v3 }
 0x1b1   :  { %v858_v53 = vadd.f32 %v857_v35, %v733_v23 }
 0x1b3   :  { %v744_v11 = vpop.f32.mrf.mxu3  ;;  %v959_v33 = vadd.f32 %v958_v30, %v858_v53 }
 0x1b4   :  { %v604_v40 = vpop.f32.mrf.mxu2 }
 0x1b5   :  { %1004 = vst [vmem:[#allocation2 + $0x58] sm:$0xff] %v959_v33  ;;  %v605_v62 = vadd.f32 %v604_v40, %v1610_v16  ;;  %v970_v60 = vpop.f32.mrf.mxu1 }
 0x1b6   :  { %v865_v21 = vpop.f32.mrf.mxu0 }
 0x1b7   :  { %v739_v24 = vadd.f32 %v738_v31, %v605_v62 }
 0x1b9   :  { %v862_v8 = vadd.f32 %v861_v37, %v739_v24 }
 0x1bb   :  { %v963_v1 = vadd.f32 %v962_v56, %v862_v8  ;;  %v750_v54 = vpop.f32.mrf.mxu3 }
 0x1bc   :  { %v609_v18 = vpop.f32.mrf.mxu2 }
 0x1bd   :  { %1005 = vst [vmem:[#allocation2 + $0x60] sm:$0xff] %v963_v1  ;;  %v610_v36 = vadd.f32 %v609_v18, %v1623_v57  ;;  %v974_v41 = vpop.f32.mrf.mxu1 }
 0x1be   :  { %v869_v39 = vpop.f32.mrf.mxu0 }
 0x1bf   :  { %v745_v49 = vadd.f32 %v744_v11, %v610_v36 }
 0x1c1   :  { %v866_v59 = vadd.f32 %v865_v21, %v745_v49 }
 0x1c3   :  { %v967_v13 = vadd.f32 %v966_v12, %v866_v59  ;;  %v756_v16 = vpop.f32.mrf.mxu3 }
 0x1c4   :  { %v614_v47 = vpop.f32.mrf.mxu2 }
 0x1c5   :  { %1006 = vst [vmem:[#allocation2 + $0x68] sm:$0xff] %v967_v13  ;;  %v615_v50 = vadd.f32 %v614_v47, %v1634_v38  ;;  %v978_v14 = vpop.f32.mrf.mxu1 }
 0x1c6   :  { %v873_v4 = vpop.f32.mrf.mxu0 }
 0x1c7   :  { %v751_v45 = vadd.f32 %v750_v54, %v615_v50 }
 0x1c9   :  { %v870_v10 = vadd.f32 %v869_v39, %v751_v45 }
 0x1cb   :  { %v971_v7 = vadd.f32 %v970_v60, %v870_v10  ;;  %v762_v25 = vpop.f32.mrf.mxu3 }
 0x1cc   :  { %v619_v58 = vpop.f32.mrf.mxu2 }
 0x1cd   :  { %1007 = vst [vmem:[#allocation2 + $0x70] sm:$0xff] %v971_v7  ;;  %v620_v27 = vadd.f32 %v619_v58, %v1645_v6  ;;  %v982_v6 = vpop.f32.mrf.mxu1 }
 0x1ce   :  { %v877_v5 = vpop.f32.mrf.mxu0 }
 0x1cf   :  { %v757_v57 = vadd.f32 %v756_v16, %v620_v27 }
 0x1d1   :  { %v874_v0 = vadd.f32 %v873_v4, %v757_v57 }
 0x1d3   :  { %v975_v32 = vadd.f32 %v974_v41, %v874_v0  ;;  %v768_v52 = vpop.f32.mrf.mxu3 }
 0x1d4   :  { %v624_v17 = vpop.f32.mrf.mxu2 }
 0x1d5   :  { %1008 = vst [vmem:[#allocation2 + $0x78] sm:$0xff] %v975_v32  ;;  %v625_v38 = vadd.f32 %v624_v17, %v1656_v48  ;;  %v986_v9 = vpop.f32.mrf.mxu1 }
 0x1d6   :  { %v881_v22 = vpop.f32.mrf.mxu0 }
 0x1d7   :  { %v763_v42 = vadd.f32 %v762_v25, %v625_v38 }
 0x1d9   :  { %v878_v19 = vadd.f32 %v877_v5, %v763_v42 }
 0x1db   :  { %v979_v34 = vadd.f32 %v978_v14, %v878_v19  ;;  %v774_v61 = vpop.f32.mrf.mxu3 }
 0x1dc   :  { %v629_v20 = vpop.f32.mrf.mxu2 }
 0x1dd   :  { %1009 = vst [vmem:[#allocation2 + $0x80] sm:$0xff] %v979_v34  ;;  %v630_v15 = vadd.f32 %v629_v20, %v1667_v26 }
 0x1de   :  { %v885_v35 = vpop.f32.mrf.mxu0 }
 0x1df   :  { %v769_v44 = vadd.f32 %v768_v52, %v630_v15 }
 0x1e1   :  { %v882_v30 = vadd.f32 %v881_v22, %v769_v44 }
 0x1e3   :  { %v983_v2 = vadd.f32 %v982_v6, %v882_v30  ;;  %v780_v63 = vpop.f32.mrf.mxu3 }
 0x1e4   :  { %v634_v28 = vpop.f32.mrf.mxu2 }
 0x1e5   :  { %1010 = vst [vmem:[#allocation2 + $0x88] sm:$0xff] %v983_v2  ;;  %v635_v43 = vadd.f32 %v634_v28, %v1678_v55  ;;  %v990_v55 = vpop.f32.mrf.mxu1 }
 0x1e6   :  { %v889_v3 = vpop.f32.mrf.mxu0 }
 0x1e7   :  { %v775_v48 = vadd.f32 %v774_v61, %v635_v43 }
 0x1e9   :  { %v886_v46 = vadd.f32 %v885_v35, %v775_v48 }
 0x1eb   :  { %v987_v31 = vadd.f32 %v986_v9, %v886_v46 }
 0x1ec   :  { %v639_v51 = vpop.f32.mrf.mxu2 }
 0x1ed   :  { %1011 = vst [vmem:[#allocation2 + $0x90] sm:$0xff] %v987_v31  ;;  %v640_v56 = vadd.f32 %v639_v51, %v1689_v29 }
 0x1ef   :  { %v781_v26 = vadd.f32 %v780_v63, %v640_v56 }
 0x1f1   :  { %v890_v37 = vadd.f32 %v889_v3, %v781_v26 }
 0x1f3   :  { %v991_v23 = vadd.f32 %v990_v55, %v890_v37 }
 0x1f5   :  { %1012 = vst [vmem:[#allocation2 + $0x98] sm:$0xff] %v991_v23 }
 0x1f6   :  { %1025 = dma.vmem_to_hbm [thread:$0]  %s1018_s28, 2560, %s1020_s3, [#allocation3], %s1156_s4, %s1156_s4, %s1157_s5  }
 0x1f7   :  { %1151 = dma.done.wait [#allocation3], 2560  }
 0x1f8   :  { %1152 = vsyncadd [#allocation3], 4294964736 }
 0x1f9   :  { %1030 = vsyncpa [#allocation3], 1 }

</bundles_post_ra>
